<compile_context>
chip_gen: v7x
topology: tpu7x:2x2x1
jax: 0.10.0
libtpu: 0.0.40
codegen_flags: <defaults>
</compile_context>

<pallas_src>
import math
from functools import partial

import jax
import jax.numpy as jnp
from jax import lax
from jax.experimental import pallas as pl
from jax.experimental.pallas import tpu as pltpu

EPS = 1e-5
VMEM_LIMIT = 64 * 1024 * 1024          # explicit scoped-VMEM budget (<= physical on v5e/v6e/v7x)


# ----------------------------------------------------------------------------
# Pallas kernels
# ----------------------------------------------------------------------------
def _sep_kernel(x_ref, dww_ref, dwb_ref, pww_ref, ob_ref, *rest,
                H, W, d, relu_in, relu_out, add_residual):
    """Fused depthwise3x3(+BN) -> pointwise1x1(+BN) (+residual, +ReLU), stride 1.

    x_ref:   (1, H+2d, W+2d, ck)   spatially padded input, one Cin chunk
    dww_ref: (9, ck)               depthwise taps (dw-BN scale folded in)
    dwb_ref: (1, ck)               dw-BN bias
    pww_ref: (ck, Cout)            pointwise weights (out-BN scale folded in)
    ob_ref:  (1, Cout)             out-BN bias
    o_ref:   (1, H*W, Cout)        output, resident across the Cin-chunk axis
    dw_ref:  (H*W, ck)             VMEM scratch holding this chunk's dw result
    """
    if add_residual:
        res_ref, o_ref, dw_ref = rest
    else:
        o_ref, dw_ref = rest

    kc = pl.program_id(1)

    @pl.when(kc == 0)
    def _init():
        o_ref[...] = jnp.zeros_like(o_ref)

    dw_w = dww_ref[...]                      # (9, ck)
    dw_b = dwb_ref[...]                      # (1, ck)

    def dw_row(h, carry):
        # input rows [h, h + 2d] of the padded image, all columns, this chunk
        win = x_ref[0, pl.ds(h, 2 * d + 1), :, :]          # (2d+1, Wp, ck)
        if relu_in:
            win = jnp.maximum(win, 0.0)
        acc = None
        for kh in range(3):
            row = win[kh * d]                              # (Wp, ck)
            for kw in range(3):
                t = row[kw * d:kw * d + W, :] * dw_w[3 * kh + kw:3 * kh + kw + 1, :]
                acc = t if acc is None else acc + t
        start = h * W
        if W % 8 == 0:
            start = pl.multiple_of(start, 8)
        dw_ref[pl.ds(start, W), :] = acc + dw_b
        return carry

    lax.fori_loop(0, H, dw_row, 0)

    # pointwise (MXU) with K-accumulation over Cin chunks directly in o_ref
    o_ref[0] = o_ref[0] + jnp.dot(dw_ref[...], pww_ref[...],
                                  preferred_element_type=jnp.float32)

    @pl.when(kc == pl.num_programs(1) - 1)
    def _epilogue():
        y = o_ref[0] + ob_ref[...]
        if add_residual:
            y = y + res_ref[0]
        if relu_out:
            y = jnp.maximum(y, 0.0)
        o_ref[0] = y


def _dw_kernel(x_ref, w_ref, b_ref, o_ref, *, H, W, d, relu_in):
    """Depthwise 3x3 conv (+fused BN affine, optional input ReLU), stride 1.

    Used only for the three stride-2 separable convs; taps are loaded straight
    from the ref so only one tap + the accumulator live in vregs.
    grid = (batch, channel-chunks).
    """
    w = w_ref[...]                                         # (9, ck)
    acc = None
    for kh in range(3):
        for kw in range(3):
            tap = x_ref[0, kh * d:kh * d + H, kw * d:kw * d + W, :]
            if relu_in:
                tap = jnp.maximum(tap, 0.0)
            t = tap * w[3 * kh + kw:3 * kh + kw + 1, :]
            acc = t if acc is None else acc + t
    o_ref[0] = acc + b_ref[...]


def _mm_kernel(x_ref, w_ref, b_ref, *rest, relu_out, add_residual):
    """(tm, K) @ (K, tn) on the MXU + bias (BN scale pre-folded into weights),
    with optional fused residual add and output ReLU."""
    if add_residual:
        res_ref, o_ref = rest
    else:
        (o_ref,) = rest
    y = jnp.dot(x_ref[...], w_ref[...], preferred_element_type=jnp.float32)
    y = y + b_ref[...]
    if add_residual:
        y = y + res_ref[...]
    if relu_out:
        y = jnp.maximum(y, 0.0)
    o_ref[...] = y


# ----------------------------------------------------------------------------
# Cached pallas_call builders (one Mosaic compile per unique shape/config)
# ----------------------------------------------------------------------------
_SEP_CACHE, _DW_CACHE, _MM_CACHE = {}, {}, {}


def _pick_ck(c):
    if c % 256 == 0:
        return 256
    if c % 128 == 0:
        return 128
    return c


def _get_sep(B, H, W, Cin, Cout, d, relu_in, relu_out, add_residual):
    key = (B, H, W, Cin, Cout, d, relu_in, relu_out, add_residual)
    if key in _SEP_CACHE:
        return _SEP_CACHE[key]
    ck = _pick_ck(Cin)
    Hp, Wp, HW = H + 2 * d, W + 2 * d, H * W
    in_specs = [
        pl.BlockSpec((1, Hp, Wp, ck), lambda b, k: (b, 0, 0, k)),
        pl.BlockSpec((9, ck), lambda b, k: (0, k)),
        pl.BlockSpec((1, ck), lambda b, k: (0, k)),
        pl.BlockSpec((ck, Cout), lambda b, k: (k, 0)),
        pl.BlockSpec((1, Cout), lambda b, k: (0, 0)),
    ]
    if add_residual:
        in_specs.append(pl.BlockSpec((1, HW, Cout), lambda b, k: (b, 0, 0)))
    fn = jax.jit(pl.pallas_call(
        partial(_sep_kernel, H=H, W=W, d=d, relu_in=relu_in,
                relu_out=relu_out, add_residual=add_residual),
        out_shape=jax.ShapeDtypeStruct((B, HW, Cout), jnp.float32),
        grid=(B, Cin // ck),
        in_specs=in_specs,
        out_specs=pl.BlockSpec((1, HW, Cout), lambda b, k: (b, 0, 0)),
        scratch_shapes=[pltpu.VMEM((HW, ck), jnp.float32)],
        compiler_params=pltpu.CompilerParams(
            dimension_semantics=("parallel", "arbitrary"),
            vmem_limit_bytes=VMEM_LIMIT),
    ))
    _SEP_CACHE[key] = fn
    return fn


def _get_dw(B, H, W, C, d, relu_in):
    key = (B, H, W, C, d, relu_in)
    if key in _DW_CACHE:
        return _DW_CACHE[key]
    ck = _pick_ck(C)
    Hp, Wp = H + 2 * d, W + 2 * d
    fn = jax.jit(pl.pallas_call(
        partial(_dw_kernel, H=H, W=W, d=d, relu_in=relu_in),
        out_shape=jax.ShapeDtypeStruct((B, H, W, C), jnp.float32),
        grid=(B, C // ck),
        in_specs=[
            pl.BlockSpec((1, Hp, Wp, ck), lambda b, c: (b, 0, 0, c)),
            pl.BlockSpec((9, ck), lambda b, c: (0, c)),
            pl.BlockSpec((1, ck), lambda b, c: (0, c)),
        ],
        out_specs=pl.BlockSpec((1, H, W, ck), lambda b, c: (b, 0, 0, c)),
        compiler_params=pltpu.CompilerParams(
            dimension_semantics=("parallel", "parallel"),
            vmem_limit_bytes=VMEM_LIMIT),
    ))
    _DW_CACHE[key] = fn
    return fn


def _get_mm(Mp, K, N, tm, tn, relu_out, add_residual):
    key = (Mp, K, N, tm, tn, relu_out, add_residual)
    if key in _MM_CACHE:
        return _MM_CACHE[key]
    in_specs = [
        pl.BlockSpec((tm, K), lambda i, j: (i, 0)),
        pl.BlockSpec((K, tn), lambda i, j: (0, j)),
        pl.BlockSpec((1, tn), lambda i, j: (0, j)),
    ]
    if add_residual:
        in_specs.append(pl.BlockSpec((tm, tn), lambda i, j: (i, j)))
    fn = jax.jit(pl.pallas_call(
        partial(_mm_kernel, relu_out=relu_out, add_residual=add_residual),
        out_shape=jax.ShapeDtypeStruct((Mp, N), jnp.float32),
        grid=(Mp // tm, N // tn),
        in_specs=in_specs,
        out_specs=pl.BlockSpec((tm, tn), lambda i, j: (i, j)),
        compiler_params=pltpu.CompilerParams(
            dimension_semantics=("parallel", "parallel"),
            vmem_limit_bytes=VMEM_LIMIT),
    ))
    _MM_CACHE[key] = fn
    return fn


# ----------------------------------------------------------------------------
# Layer wrappers (glue: spatial padding / reshape / subsample in plain JAX)
# ----------------------------------------------------------------------------
def matmul(x, w, b, relu_out=False, residual=None):
    M, K = x.shape
    N = w.shape[1]
    if M <= 512:
        tm = -(-M // 8) * 8                       # single M tile
    else:
        tm = 256                                  # M-tiled (keeps VMEM bounded)
    Mp = -(-M // tm) * tm
    if N <= 1024:
        tn = N                                    # whole N in one step (tiny-M layers)
    elif N % 256 == 0:
        tn = 256
    else:
        tn = 128
    if Mp != M:
        x = jnp.pad(x, ((0, Mp - M), (0, 0)))
        if residual is not None:
            residual = jnp.pad(residual, ((0, Mp - M), (0, 0)))
    fn = _get_mm(Mp, K, N, tm, tn, relu_out, residual is not None)
    y = fn(x, w, b) if residual is None else fn(x, w, b, residual)
    return y if Mp == M else y[:M]


def sep_conv(x, p, dilation, stride, relu_in, relu_out=False, residual=None):
    """SeparableConv2d (+ its two BNs, folded) with optional fused residual/ReLU."""
    B, H, W, Cin = x.shape
    Cout = p['pw'].shape[1]
    d = dilation
    xp = jnp.pad(x, ((0, 0), (d, d), (d, d), (0, 0)))       # fixed_padding
    if stride == 1:
        fn = _get_sep(B, H, W, Cin, Cout, d, relu_in, relu_out,
                      residual is not None)
        args = [xp, p['dw'], p['dwb'], p['pw'], p['ob']]
        if residual is not None:
            args.append(residual.reshape(B, H * W, Cout))
        y = fn(*args)
        return y.reshape(B, H, W, Cout)
    # TODO(synk): stride-2 depthwise is computed at stride 1 and subsampled in
    # the wrapper (direct strided taps / 4-phase decomposition not implemented).
    dw = _get_dw(B, H, W, Cin, d, relu_in)(xp, p['dw'], p['dwb'])
    dw = dw[:, ::stride, ::stride, :]
    Ho, Wo = dw.shape[1], dw.shape[2]
    res2d = None if residual is None else residual.reshape(B * Ho * Wo, Cout)
    y = matmul(dw.reshape(B * Ho * Wo, Cin), p['pw'], p['ob'],
               relu_out=relu_out, residual=res2d)
    return y.reshape(B, Ho, Wo, Cout)


def conv1x1(x, w, b, stride=1):
    if stride != 1:
        x = x[:, ::stride, ::stride, :]
    B, H, W, Cin = x.shape
    N = w.shape[1]
    return matmul(x.reshape(B * H * W, Cin), w, b).reshape(B, H, W, N)


def conv3x3_bn(x, wmat, b, stride, pad, relu_out):
    # Standard 3x3 conv (conv1/conv2) via wrapper-side im2col + MXU matmul.
    # TODO(synk): move the im2col into the kernel (9 accumulated tap matmuls)
    # to avoid writing the 9x-expanded activation to HBM.
    B, H, W, Cin = x.shape
    N = wmat.shape[1]
    xp = jnp.pad(x, ((0, 0), (pad, pad), (pad, pad), (0, 0)))
    Ho = (H + 2 * pad - 3) // stride + 1
    Wo = (W + 2 * pad - 3) // stride + 1
    cols = [xp[:, i:i + Ho * stride:stride, j:j + Wo * stride:stride, :]
            for i in range(3) for j in range(3)]
    X = jnp.concatenate(cols, axis=-1).reshape(B * Ho * Wo, 9 * Cin)
    y = matmul(X, wmat, b, relu_out=relu_out)
    return y.reshape(B, Ho, Wo, N)


def block_forward(x, bp, relu_after=False):
    if bp['skip'] is not None:
        skip = conv1x1(x, bp['skip']['w'], bp['skip']['b'],
                       stride=bp['skip']['stride'])
    else:
        skip = x
    out = x
    n = len(bp['units'])
    for idx, u in enumerate(bp['units']):
        last = idx == n - 1
        out = sep_conv(out, u['sep'], u['dilation'], u['stride'], u['relu_in'],
                       relu_out=(relu_after and last),
                       residual=skip if last else None)
    return out


# ----------------------------------------------------------------------------
# Deterministic parameter initialization (mirrors the PyTorch __init__),
# with BN scales folded into weights and channel counts padded to 128 lanes.
# ----------------------------------------------------------------------------
def bn_affine(c):
    # eval-mode BN: gamma=1, beta=0, running_mean=0, running_var=1
    gamma = jnp.ones((c,), jnp.float32)
    beta = jnp.zeros((c,), jnp.float32)
    mean = jnp.zeros((c,), jnp.float32)
    var = jnp.ones((c,), jnp.float32)
    scale = gamma / jnp.sqrt(var + EPS)
    shift = beta - mean * scale
    return scale, shift


def cpad(c):
    return c if c <= 128 else -(-c // 128) * 128


def kaiming_conv(key, shape):
    # shape = (O, I_per_group, kh, kw); kaiming_normal_(mode='fan_out', relu)
    fan_out = shape[0] * shape[2] * shape[3]
    return math.sqrt(2.0 / fan_out) * jax.random.normal(key, shape, jnp.float32)


def init_sep(key, cin, cout):
    k1, k2 = jax.random.split(key)
    dw_w = kaiming_conv(k1, (cin, 1, 3, 3))
    pw_w = kaiming_conv(k2, (cout, cin, 1, 1))
    dw_s, dw_b = bn_affine(cin)       # BN between depthwise and pointwise
    out_s, out_b = bn_affine(cout)    # BN right after the pointwise
    cin_p, cout_p = cpad(cin), cpad(cout)
    dw = jnp.transpose(dw_w[:, 0], (1, 2, 0)).reshape(9, cin) * dw_s[None, :]
    pw = jnp.transpose(pw_w[:, :, 0, 0], (1, 0)) * out_s[None, :]
    return {
        'dw': jnp.pad(dw, ((0, 0), (0, cin_p - cin))),
        'dwb': jnp.pad(dw_b, (0, cin_p - cin)).reshape(1, cin_p),
        'pw': jnp.pad(pw, ((0, cin_p - cin), (0, cout_p - cout))),
        'ob': jnp.pad(out_b, (0, cout_p - cout)).reshape(1, cout_p),
    }


def init_block(key, inplanes, planes, reps, stride=1, dilation=1,
               start_with_relu=True, grow_first=True, is_last=True):
    keys = iter(jax.random.split(key, 16))
    units = []                      # [relu_before, cin, cout, stride, dilation]
    filters = inplanes
    if grow_first:
        units.append([True, inplanes, planes, 1, dilation])
        filters = planes
    for _ in range(reps - 1):
        units.append([True, filters, filters, 1, dilation])
    if not grow_first:
        units.append([True, inplanes, planes, 1, dilation])
    if stride != 1:
        units.append([True, planes, planes, 2, 1])
    if stride == 1 and is_last:
        units.append([True, planes, planes, 1, 1])
    if not start_with_relu:
        units[0][0] = False

    p = {'units': []}
    for (r, ci, co, s, d) in units:
        p['units'].append({'relu_in': r, 'stride': s, 'dilation': d,
                           'sep': init_sep(next(keys), ci, co)})
    if planes != inplanes or stride != 1:
        w = kaiming_conv(next(keys), (planes, inplanes, 1, 1))
        sc, sh = bn_affine(planes)
        cin_p, cout_p = cpad(inplanes), cpad(planes)
        wm = jnp.transpose(w[:, :, 0, 0], (1, 0)) * sc[None, :]
        p['skip'] = {
            'w': jnp.pad(wm, ((0, cin_p - inplanes), (0, cout_p - planes))),
            'b': jnp.pad(sh, (0, cout_p - planes)).reshape(1, cout_p),
            'stride': stride,
        }
    else:
        p['skip'] = None
    return p


def init_xception(key, output_stride=16):
    if output_stride == 16:
        entry_block3_stride, middle_dil, exit_dil = 2, 1, (1, 2)
    elif output_stride == 8:
        entry_block3_stride, middle_dil, exit_dil = 1, 2, (2, 4)
    else:
        raise NotImplementedError
    keys = iter(jax.random.split(key, 64))
    p = {'exit_dil': exit_dil}

    w1 = kaiming_conv(next(keys), (32, 3, 3, 3))
    s1, b1 = bn_affine(32)
    p['conv1_w'] = jnp.transpose(w1, (2, 3, 1, 0)).reshape(27, 32) * s1[None, :]
    p['conv1_b'] = b1.reshape(1, 32)

    w2 = kaiming_conv(next(keys), (64, 32, 3, 3))
    s2, b2 = bn_affine(64)
    p['conv2_w'] = jnp.transpose(w2, (2, 3, 1, 0)).reshape(288, 64) * s2[None, :]
    p['conv2_b'] = b2.reshape(1, 64)

    p['block1'] = init_block(next(keys), 64, 128, 2, stride=2,
                             start_with_relu=False, grow_first=True)
    p['block2'] = init_block(next(keys), 128, 256, 2, stride=2,
                             start_with_relu=False, grow_first=True)
    p['block3'] = init_block(next(keys), 256, 728, 2, stride=entry_block3_stride,
                             start_with_relu=True, grow_first=True, is_last=True)
    for i in range(4, 20):
        p[f'block{i}'] = init_block(next(keys), 728, 728, 3, stride=1,
                                    dilation=middle_dil, start_with_relu=True,
                                    grow_first=True)
    p['block20'] = init_block(next(keys), 728, 1024, 2, stride=1,
                              dilation=exit_dil[0], start_with_relu=True,
                              grow_first=False, is_last=True)
    p['conv3'] = init_sep(next(keys), 1024, 1536)   # bn3 folded into 'pw'/'ob'
    p['conv4'] = init_sep(next(keys), 1536, 1536)   # bn4 folded
    p['conv5'] = init_sep(next(keys), 1536, 2048)   # bn5 folded
    return p


def xception_forward(x_nchw, p):
    x = jnp.transpose(x_nchw, (0, 2, 3, 1)).astype(jnp.float32)   # NCHW -> NHWC
    x = conv3x3_bn(x, p['conv1_w'], p['conv1_b'], stride=2, pad=1, relu_out=True)
    x = conv3x3_bn(x, p['conv2_w'], p['conv2_b'], stride=1, pad=1, relu_out=True)

    x = block_forward(x, p['block1'], relu_after=True)     # x = relu(block1(x))
    low_level_feat = x
    x = block_forward(x, p['block2'])
    x = block_forward(x, p['block3'])
    for i in range(4, 20):
        x = block_forward(x, p[f'block{i}'])
    x = block_forward(x, p['block20'], relu_after=True)    # x = relu(block20(x))

    d = p['exit_dil'][1]
    x = sep_conv(x, p['conv3'], d, 1, relu_in=False, relu_out=True)
    x = sep_conv(x, p['conv4'], d, 1, relu_in=False, relu_out=True)
    x = sep_conv(x, p['conv5'], d, 1, relu_in=False, relu_out=True)

    return (jnp.transpose(x, (0, 3, 1, 2)),
            jnp.transpose(low_level_feat, (0, 3, 1, 2)))           # NHWC -> NCHW


if __name__ == "__main__":
    key = jax.random.PRNGKey(0)
    pkey, xkey = jax.random.split(key)
    params = init_xception(pkey, output_stride=16)
    x = jax.random.normal(xkey, (1, 3, 64, 64), dtype=jnp.float32)
    out, low_level = xception_forward(x, params)
    jax.block_until_ready((out, low_level))
    assert out.shape == (1, 2048, 4, 4), out.shape
    assert low_level.shape == (1, 128, 16, 16), low_level.shape
    print("KERNEL_OK")
</pallas_src>

<mosaic_0001>
module attributes {stable_mosaic.version = 11 : i64} {
  func.func @_mm_kernel(%arg0: i32, %arg1: i32, %arg2: memref<256x27xf32, #tpu.memory_space<vmem>>, %arg3: memref<27x32xf32, #tpu.memory_space<vmem>>, %arg4: memref<1x32xf32, #tpu.memory_space<vmem>>, %arg5: memref<256x32xf32, #tpu.memory_space<vmem>>) attributes {dimension_semantics = [#tpu.dimension_semantics<parallel>, #tpu.dimension_semantics<parallel>], iteration_bounds = array<i64: 4, 1>, scalar_prefetch = 0 : i64, scratch_operands = 0 : i64, tpu.core_type = #tpu.core_type<tc>, window_params = [{transform_indices = @transform_0, window_bounds = array<i64: 256, 27>}, {transform_indices = @transform_1, window_bounds = array<i64: 27, 32>}, {transform_indices = @transform_2, window_bounds = array<i64: 1, 32>}, {transform_indices = @transform_3, window_bounds = array<i64: 256, 32>}]} {
    %c0 = arith.constant 0 : index
    %c0_0 = arith.constant 0 : index
    %0 = vector.load %arg2[%c0, %c0_0] : memref<256x27xf32, #tpu.memory_space<vmem>>, vector<256x27xf32>
    %c0_1 = arith.constant 0 : index
    %c0_2 = arith.constant 0 : index
    %1 = vector.load %arg3[%c0_1, %c0_2] : memref<27x32xf32, #tpu.memory_space<vmem>>, vector<27x32xf32>
    %cst = arith.constant dense<0.000000e+00> : vector<256x32xf32>
    %2 = tpu.matmul %0, %1, %cst {dimension_numbers = #tpu.dot_dimension_numbers<[1], [0], [0], [1], [0, 0, 1, 1], [], []>} : vector<256x27xf32>, vector<27x32xf32>, vector<256x32xf32> -> vector<256x32xf32>
    %c0_3 = arith.constant 0 : index
    %c0_4 = arith.constant 0 : index
    %3 = vector.load %arg4[%c0_3, %c0_4] : memref<1x32xf32, #tpu.memory_space<vmem>>, vector<1x32xf32>
    %4 = vector.broadcast %3 : vector<1x32xf32> to vector<256x32xf32>
    %5 = arith.addf %2, %4 : vector<256x32xf32>
    %cst_5 = arith.constant 0.000000e+00 : f32
    %6 = vector.broadcast %cst_5 : f32 to vector<256x32xf32>
    %7 = arith.maximumf %5, %6 : vector<256x32xf32>
    %c0_6 = arith.constant 0 : index
    %c0_7 = arith.constant 0 : index
    %8 = vector.load %arg5[%c0_6, %c0_7] : memref<256x32xf32, #tpu.memory_space<vmem>>, vector<256x32xf32>
    tpu.vector_store %arg5[%c0_6, %c0_7], %7 {strides = array<i32>} : memref<256x32xf32, #tpu.memory_space<vmem>>, vector<256x32xf32>,
    return
  }
  func.func @transform_0(%arg0: i32, %arg1: i32) -> (i32, i32) {
    %c0_i32 = arith.constant 0 : i32
    %c0_i32_0 = arith.constant 0 : i32
    return %arg0, %c0_i32 : i32, i32
  }
  func.func @transform_1(%arg0: i32, %arg1: i32) -> (i32, i32) {
    %c0_i32 = arith.constant 0 : i32
    %c0_i32_0 = arith.constant 0 : i32
    return %c0_i32, %arg1 : i32, i32
  }
  func.func @transform_2(%arg0: i32, %arg1: i32) -> (i32, i32) {
    %c0_i32 = arith.constant 0 : i32
    %c0_i32_0 = arith.constant 0 : i32
    return %c0_i32, %arg1 : i32, i32
  }
  func.func @transform_3(%arg0: i32, %arg1: i32) -> (i32, i32) {
    %c0_i32 = arith.constant 0 : i32
    return %arg0, %arg1 : i32, i32
  }
}

</mosaic_0001>

<bundles_post_ra>
// kernel: tpu_custom_call.1
= control target key start
LH: loop header
LB: loop body
LE: loop exit
PB: predicated region body
PF: predicated region fallthrough
CT: control target
= control target key end

     0   :  { %8 = vsyncpa [#allocation3], 0  ;;  %s1677_s0 = inlined_call_operand.hbm [shape: f32[1024,27], index: 0, kind: input, shape index: {}]   ;;  %s1678_s1 = inlined_call_operand.hbm [shape: f32[27,32], index: 1, kind: input, shape index: {}]   ;;  %s1679_s2 = inlined_call_operand.hbm [shape: f32[1,32], index: 2, kind: input, shape index: {}]   ;;  %s1680_s3 = inlined_call_operand.hbm [shape: f32[1024,32], index: 3, kind: output, shape index: {}]  }
   0x1   :  { %10 = vsyncpa [#allocation3 + $0x1], 0 }
   0x2   :  { %11 = vsyncpa [#allocation6], 0 }
   0x3   :  { %12 = vsyncpa [#allocation4], 0 }
   0x4   :  { %14 = vsyncpa [#allocation4 + $0x1], 0  ;;  %s1253_s12 = smov 0   ;;  %s1255_s13 = smov 0  }
   0x5   :  { %s1257_s14 = smov 0   ;;  %s1259_s15 = smov 0  }
   0x6   :  { %s1261_s16 = smov 0   ;;  %s1263_s17 = smov 0  }
   0x7 LB: > { %s801_s18 = sadd.s32 4294967295, %s1222_s17   ;;  %s802_s19 = sadd.s32 4294967294, %s1222_s17   ;;  %s1222_s17 = sphi %s1263_s17, %s20_s17   ;;  %s1218_s16 = sphi %s1261_s16, %s1702_s16   ;;  %s1214_s15 = sphi %s1259_s15, %s1701_s15   ;;  %s1210_s14 = sphi %s1257_s14, %s1700_s14   ;;  %s1206_s13 = sphi %s1255_s13, %s1699_s13   ;;  %s1202_s12 = sphi %s1253_s12, %s1698_s12  }
   0x8   : > { %p52_p0 = scmp.ne.s32.totalorder %s1206_s13, %s1202_s12  ;;  %p1287_p1 = scmp.eq.s32.totalorder %s801_s18, 0 }
   0x9   : > { %p1291_p2 = scmp.eq.s32.totalorder %s801_s18, 3  ;;  %p136_p3 = scmp.eq.s32.totalorder %s802_s19, 3 }
   0xa   : > { %s1685_s20 = scalar_select %p1287_p1, 1, 0 }
   0xb   : > { %s1686_s21 = scalar_select %p1291_p2, 1, 0 }
   0xc   : > { %p1297_p4 = por %p1287_p1, %p52_p0  ;;  %p803_p5 = scmp.ge.s32.totalorder %s1222_s17, 1 }
   0xd   : > { %p1302_p6 = por %p136_p3, %p52_p0  ;;  %p143_p7 = scmp.lt.s32.totalorder %s1222_s17, 5 }
   0xe   : > { %s1687_s22 = scalar_select %p1297_p4, 1, 0 }
   0xf   : > { %s1688_s23 = scalar_select %p1302_p6, 1, 0 }
  0x10   : > { %p1307_p8 = pnand %p803_p5, %p143_p7  ;;  %s1224_s25 = smov [#allocation5]  }
  0x11   : > { %s157_s26 = sshll.u32 %s1224_s25, 4  ;;  %s1225_s28 = smov [#allocation7]   ;;  %s158_s26 = int_to_ptr.vmem [resolvable:$true] %s157_s26 }
  0x12   : > { %s1689_s24 = scalar_select %p1307_p8, 1, 0 }
  0x13   : > { %p974_p9 = pneg %p1307_p8  ;;  %s173_s29 = sshll.u32 %s1225_s28, 4  ;;  %s1319_s29 = int_to_ptr.vmem [resolvable:$true] %s173_s29 }
  0x14   : > { %s1050_s5 = scalar_lea.hbm %s1678_s1, 512 }
  0x15   : > { %p1315_p10 = pnand %p974_p9, %p1287_p1  ;;  %p1051_p11 = scmp.ne.s32.totalorder %s1678_s1, %s1050_s5 }
  0x16   : > { %p1057_p3 = scmp.lt.u32.totalorder %s1050_s5, %s1678_s1 }
  0x17   : > { %p1052_p12 = pneg %p1315_p10 }
  0x19   : > { %p1053_p13 = pnand %p1052_p12, %p1051_p11 }
  0x1b   : > { %p1054_p0 = pneg %p1053_p13 }
  0x1d   : > { %p1059_p5 = pnand %p1057_p3, %p1054_p0 }
  0x1f   : > { %1062 = shalt.err (!%p1059_p5)
}
  0x20   : > { %s1063_s10 = scalar_lea.vmem %s158_s26, 512  ;;  %p1071_p1 = scmp.lt.s32.totalorder %s158_s26, %s158_s26 }
  0x21   : > { %p1064_p7 = scmp.ne.s32.totalorder %s158_s26, %s1063_s10  ;;  %p1072_p4 = scmp.lt.s32.totalorder %s1063_s10, %s1063_s10 }
  0x23   : > { %p1066_p9 = pnand %p1064_p7, %p1052_p12  ;;  %p1073_p8 = por %p1072_p4, %p1071_p1 }
  0x25   : > { %p1067_p6 = pneg %p1066_p9 }
  0x27   : > { %p1074_p2 = pnand %p1073_p8, %p1067_p6 }
  0x29   : > { %1077 = shalt.err (!%p1074_p2)
}
  0x2a   : > { %s1226_s11 = smov 128   ;;  %s1227_s18 = smov 8  }
  0x2b   : > { %977 = dma.hbm_to_vmem [thread:$0]  (!%p1315_p10), %s1678_s1, 512, %s158_s26, [#allocation6], %s1226_s11, %s1226_s11, %s1227_s18  }
  0x2c   : > { %s1078_s4 = scalar_lea.hbm %s1679_s2, 16 }
  0x2d   : > { %p1079_p1 = scmp.ne.s32.totalorder %s1679_s2, %s1078_s4  ;;  %p1085_p6 = scmp.lt.u32.totalorder %s1078_s4, %s1679_s2 }
  0x2f   : > { %p1081_p2 = pnand %p1079_p1, %p1052_p12 }
  0x31   : > { %p1082_p4 = pneg %p1081_p2 }
  0x33   : > { %p1087_p8 = pnand %p1085_p6, %p1082_p4 }
  0x35   : > { %1090 = shalt.err (!%p1087_p8)
}
  0x36   : > { %s1091_s26 = scalar_lea.vmem %s1319_s29, 16  ;;  %s1098_s9 = scalar_lea.vmem %s1319_s29, 32 }
  0x37   : > { %p1092_p11 = scmp.ne.s32.totalorder %s1319_s29, %s1091_s26  ;;  %p1099_p3 = scmp.lt.s32.totalorder %s1319_s29, %s1319_s29 }
  0x38   : > { %p1100_p5 = scmp.lt.s32.totalorder %s1098_s9, %s1091_s26 }
  0x39   : > { %p1094_p13 = pnand %p1092_p11, %p1052_p12 }
  0x3a   : > { %p1101_p7 = por %p1100_p5, %p1099_p3 }
  0x3b   : > { %p1095_p0 = pneg %p1094_p13 }
  0x3d   : > { %p1102_p9 = pnand %p1101_p7, %p1095_p0 }
  0x3f   : > { %1105 = shalt.err (!%p1102_p9)
}
  0x40   : > { %980 = dma.hbm_to_vmem [thread:$0]  (!%p1315_p10), %s1679_s2, 16, %s1319_s29, [#allocation6]  }
  0x41   : > { %s32_s25 = sadd.s32 1, %s1218_s16  ;;  %s39_s28 = sadd.s32 1, %s1210_s14 }
  0x42   : > { %p34_p12 = scmp.ge.s32.totalorder %s32_s25, 4  ;;  %p46_p1 = scmp.ne.s32.totalorder %s1210_s14, %s1206_s13 }
  0x43   : > { %p47_p2 = scmp.eq.s32.totalorder %s1222_s17, 0  ;;  %p991_p4 = scmp.lt.s32.totalorder %s1222_s17, 4 }
  0x44   : > { %s1704_s25 = smov (%p34_p12, %s32_s25), 0  ;;  %p1691_p8 = scmp.ne.s32.totalorder %s1686_s21, 0 }
  0x45   : > { %p48_p6 = por %p47_p2, %p46_p1  ;;  %s36_s30 = ssub.s32 %s1218_s16, %s1704_s25 }
  0x46   : > { %p1382_p11 = por %p1691_p8, %p46_p1  ;;  %s184_s4 = sand.u32 1, %s1210_s14  }
  0x47   : > { %p37_p13 = scmp.eq.s32.totalorder %s36_s30, 0  ;;  %s807_s29 = sshll.u32 %s184_s4, 8 }
  0x48   : > { %s854_s5 = sshll.u32 %s1218_s16, 12  ;;  %s188_s21 = scalar_lea.vmem [#allocation2], %s807_s29 }
  0x49   : > { %s1391_s6 = scalar_select %p37_p13, %s1210_s14, %s39_s28  }
  0x4a   : > { %s1396_s26 = scalar_lea.hbm %s1677_s0, %s854_s5  ;;  %s195_s9 = sshll.u32 %s188_s21, 4  ;;  %s1404_s9 = int_to_ptr.vmem [resolvable:$true] %s195_s9 }
  0x4b   : > { %p1400_p10 = pnand %p991_p4, %p48_p6  ;;  %s1406_s19 = scalar_lea.sflag [#allocation3], %s184_s4 }
  0x4c   : > { %s1106_s28 = scalar_lea.hbm %s1396_s26, 4096  ;;  %s1111_s5 = scalar_lea.hbm %s1677_s0, 16384 }
  0x4d   : > { %p1107_p0 = scmp.ne.s32.totalorder %s1396_s26, %s1106_s28  ;;  %p1108_p3 = pneg %p1400_p10 }
  0x4e   : > { %p1112_p9 = scmp.lt.u32.totalorder %s1396_s26, %s1677_s0  ;;  %p1113_p12 = scmp.lt.u32.totalorder %s1111_s5, %s1106_s28 }
  0x4f   : > { %p1109_p5 = pnand %p1108_p3, %p1107_p0  ;;  %p1115_p2 = scmp.lt.u32.totalorder %s1106_s28, %s1396_s26 }
  0x50   : > { %p1114_p1 = por %p1113_p12, %p1112_p9 }
  0x51   : > { %p1110_p7 = pneg %p1109_p5 }
  0x52   : > { %p1116_p4 = por %p1115_p2, %p1114_p1 }
  0x54   : > { %p1117_p6 = pnand %p1116_p4, %p1110_p7 }
  0x56   : > { %1120 = shalt.err (!%p1117_p6)
}
  0x57   : > { %s1121_s4 = scalar_lea.vmem %s1404_s9, 4096  ;;  %s1228_s21 = smov [#allocation2]  }
  0x58   : > { %p1122_p8 = scmp.ne.s32.totalorder %s1404_s9, %s1121_s4  ;;  %s1126_s30 = sshll.u32 %s1228_s21, 4  ;;  %s1127_s30 = int_to_ptr.vmem [resolvable:$false] %s1126_s30 }
  0x59   : > { %s1128_s29 = scalar_lea.vmem %s1127_s30, 8192  ;;  %p1129_p5 = scmp.lt.s32.totalorder %s1404_s9, %s1127_s30 }
  0x5a   : > { %p1124_p13 = pnand %p1122_p8, %p1108_p3  ;;  %p1130_p9 = scmp.lt.s32.totalorder %s1128_s29, %s1121_s4 }
  0x5c   : > { %p1125_p0 = pneg %p1124_p13  ;;  %p1131_p12 = por %p1130_p9, %p1129_p5 }
  0x5e   : > { %p1132_p1 = pnand %p1131_p12, %p1125_p0 }
  0x60   : > { %1135 = shalt.err (!%p1132_p1)
}
  0x61   : > { %984 = dma.hbm_to_vmem [thread:$0]  (!%p1400_p10), %s1396_s26, 4096, %s1404_s9, %s1406_s19, %s1226_s11, %s1226_s11, %s1227_s18  }
  0x62   : > { %p1694_p3 = scmp.ne.s32.totalorder %s1689_s24, 0 }
  0x63   : > { %s1440_s28 = sand.u32 (!%p1694_p3), 1, %s1206_s13   ;;  %p1695_p7 = scmp.ne.s32.totalorder (!%p1694_p3), %s1687_s22, 0 }
  0x64   : > { %207 = sbr.rel (%p1694_p3) target bundleno = 383 (0x17f), region = 32  ;;  %s811_s5 = sshll.u32 (!%p1694_p3), %s1440_s28, 8 }
  0x65   : > { %s210_s7 = scalar_lea.sflag (!%p1694_p3), [#allocation3], %s1440_s28  ;;  %s1446_s10 = scalar_lea.vmem (!%p1694_p3), [#allocation2], %s811_s5 }
  0x6b   : > { %1189 = dma.done.wait (%p1695_p7), %s210_s7, 4096  }
  0x6c   : > { %1191 = vsyncadd (%p1695_p7), %s210_s7, 4294963200  ;;  %p1696_p10 = scmp.ne.s32.totalorder %s1685_s20, 0 }
  0x6e   : > { %1193 = dma.done.wait (%p1696_p10), [#allocation6], 528  }
  0x6f   : > { %1195 = vsyncadd (%p1696_p10), [#allocation6], 4294966768  ;;  %vm386_vm0 = vcmask 1042432   ;;  %vm289_vm1 = vcmask 220160   ;;  %v278_v0 = vld [vmem:[#allocation5] sm:$0xff]  ;;  %v279_v1 = vld [vmem:[#allocation5 + $0x8] sm:$0xff] }
  0x70   : > { %v280_v2 = vld [vmem:[#allocation5 + $0x10] sm:$0xff]  ;;  %v948_v3 = vpack.c.bf16 %v279_v1, %v278_v0  ;;  %v281_v4 = vld [vmem:[#allocation5 + $0x18] sm:$0x7]  ;;  %v246_v5 = vld [vmem:[%s1446_s10] sm:$0xff]  ;;  %vm1229_vm2 = vmmov 1   ;;  %vm647_vm4 = vcmask 261120  }
  0x71   : > { %v262_v6 = vld [vmem:[%s1446_s10 + $0x80] sm:$0xff]  ;;  %v952_v7 = vpack.c.bf16 %v281_v4, %v280_v2  ;;  %vm953_vm3 = vmpackc.low %vm386_vm0, %vm1229_vm2  ;;  %900 = vmatprep.mubr.msk.f32.mxu0 %vm289_vm1, %v246_v5  ;;  %v247_v8 = vld [vmem:[%s1446_s10 + $0x8] sm:$0xff]  ;;  %s1528_s20 = scalar_lea.vmem [#allocation8], %s811_s5  ;;  %s855_s22 = sshll.u32 %s1214_s15, 12 }
  0x72   : > { %924 = vmatprep.mubr.msk.f32.mxu1 %vm289_vm1, %v262_v6  ;;  %949 = vmatprep.subr.bf16.mxu0 %v948_v3  ;;  %v263_v9 = vld [vmem:[%s1446_s10 + $0x88] sm:$0xff]  ;;  %v248_v10 = vld [vmem:[%s1446_s10 + $0x10] sm:$0xff]  ;;  %v249_v12 = vld [vmem:[%s1446_s10 + $0x18] sm:$0xff]  ;;  %s695_s24 = sshll.u32 %s1528_s20, 4  ;;  %s1619_s18 = scalar_lea.hbm %s1680_s3, %s855_s22  ;;  %s1621_s24 = int_to_ptr.vmem [resolvable:$true] %s695_s24 }
  0x73   : > { %958 = vmatprep.subr.bf16.mxu1 %v948_v3  ;;  %951 = vmatpush3.bf16.msra.mxu0 %v948_v3  ;;  %v264_v11 = vld [vmem:[%s1446_s10 + $0x90] sm:$0xff]  ;;  %v265_v13 = vld [vmem:[%s1446_s10 + $0x98] sm:$0xff]  ;;  %v250_v14 = vld [vmem:[%s1446_s10 + $0x20] sm:$0xff]  ;;  %s681_s26 = scalar_lea.sflag [#allocation4], %s1440_s28  ;;  %s1136_s9 = scalar_lea.vmem %s1621_s24, 4096 }
  0x74   : > { %960 = vmatpush3.bf16.msra.mxu1 %v948_v3  ;;  %954 = vmatprep.subr.msk.bf16.mxu0 %vm953_vm3, %v952_v7  ;;  %v266_v15 = vld [vmem:[%s1446_s10 + $0xa0] sm:$0xff]  ;;  %v251_v16 = vld [vmem:[%s1446_s10 + $0x28] sm:$0xff]  ;;  %v252_v18 = vld [vmem:[%s1446_s10 + $0x30] sm:$0xff]  ;;  %p1137_p2 = scmp.ne.s32.totalorder %s1621_s24, %s1136_s9  ;;  %s1230_s19 = smov [#allocation8]  }
  0x75   : > { %959 = vmatprep.subr.msk.bf16.mxu1 %vm953_vm3, %v952_v7  ;;  %v267_v17 = vld [vmem:[%s1446_s10 + $0xa8] sm:$0xff]  ;;  %v268_v19 = vld [vmem:[%s1446_s10 + $0xb0] sm:$0xff]  ;;  %v253_v20 = vld [vmem:[%s1446_s10 + $0x38] sm:$0xff]  ;;  %s1140_s8 = sshll.u32 %s1230_s19, 4  ;;  %s1141_s8 = int_to_ptr.vmem [resolvable:$false] %s1140_s8 }
  0x76   : > { %v269_v21 = vld [vmem:[%s1446_s10 + $0xb8] sm:$0xff]  ;;  %v254_v22 = vld [vmem:[%s1446_s10 + $0x40] sm:$0xff]  ;;  %v255_v24 = vld [vmem:[%s1446_s10 + $0x48] sm:$0xff]  ;;  %p1138_p4 = pnand %p1137_p2, %p1382_p11  ;;  %s1142_s4 = scalar_lea.vmem %s1141_s8, 8192 }
  0x77   : > { %957 = vmatpush3.bf16.msk.msra.mxu0 %vm953_vm3, %v952_v7  ;;  %v270_v23 = vld [vmem:[%s1446_s10 + $0xc0] sm:$0xff]  ;;  %v271_v25 = vld [vmem:[%s1446_s10 + $0xc8] sm:$0xff]  ;;  %v256_v26 = vld [vmem:[%s1446_s10 + $0x50] sm:$0xff]  ;;  %p1143_p8 = scmp.lt.s32.totalorder %s1621_s24, %s1141_s8  ;;  %p1144_p13 = scmp.lt.s32.totalorder %s1142_s4, %s1136_s9 }
  0x78   : > { %961 = vmatpush3.bf16.msk.msra.mxu1 %vm953_vm3, %v952_v7  ;;  %v272_v27 = vld [vmem:[%s1446_s10 + $0xd0] sm:$0xff]  ;;  %v257_v28 = vld [vmem:[%s1446_s10 + $0x58] sm:$0xff]  ;;  %v258_v30 = vld [vmem:[%s1446_s10 + $0x60] sm:$0xff]  ;;  %p1139_p6 = pneg %p1138_p4 }
  0x79   : > { %v273_v29 = vld [vmem:[%s1446_s10 + $0xd8] sm:$0xff]  ;;  %v274_v31 = vld [vmem:[%s1446_s10 + $0xe0] sm:$0xff]  ;;  %v259_v32 = vld [vmem:[%s1446_s10 + $0x68] sm:$0xff]  ;;  %p1145_p0 = por %p1144_p13, %p1143_p8 }
  0x7a   : > { %901 = vmatmul.mubr.msk.f32.vlgmr.msra.gmra.mrb[0].mxu0 %vm289_vm1, %v247_v8  ;;  %v275_v33 = vld [vmem:[%s1446_s10 + $0xe8] sm:$0xff]  ;;  %v260_v34 = vld [vmem:[%s1446_s10 + $0x70] sm:$0xff]  ;;  %v261_v36 = vld [vmem:[%s1446_s10 + $0x78] sm:$0xff] }
  0x7b   : > { %925 = vmatmul.mubr.msk.f32.vlgmr.msra.gmra.mrb[0].mxu1 %vm289_vm1, %v263_v9  ;;  %903 = vmatprep.mubr.msk.f32.mxu0 %vm289_vm1, %v248_v10  ;;  %v276_v35 = vld [vmem:[%s1446_s10 + $0xf0] sm:$0xff]  ;;  %v277_v37 = vld [vmem:[%s1446_s10 + $0xf8] sm:$0xff]  ;;  %v1520_v38 = vld [vmem:[#allocation7] ss:$0 sm:$0xff]  ;;  %p1146_p5 = pnand %p1145_p0, %p1139_p6 }
  0x7c   : > { %927 = vmatprep.mubr.msk.f32.mxu1 %vm289_vm1, %v264_v11 }
  0x7e   : > { %904 = vmatmul.mubr.msk.f32.gmra.mrb[2].mxu0 %vm289_vm1, %v249_v12 }
  0x7f   : > { %928 = vmatmul.mubr.msk.f32.gmra.mrb[2].mxu1 %vm289_vm1, %v265_v13  ;;  %906 = vmatprep.mubr.msk.f32.mxu0 %vm289_vm1, %v250_v14 }
  0x80   : > { %930 = vmatprep.mubr.msk.f32.mxu1 %vm289_vm1, %v266_v15 }
  0x82   : > { %907 = vmatmul.mubr.msk.f32.gmra.mrb[4].mxu0 %vm289_vm1, %v251_v16 }
  0x83   : > { %931 = vmatmul.mubr.msk.f32.gmra.mrb[4].mxu1 %vm289_vm1, %v267_v17  ;;  %909 = vmatprep.mubr.msk.f32.mxu0 %vm289_vm1, %v252_v18 }
  0x84   : > { %933 = vmatprep.mubr.msk.f32.mxu1 %vm289_vm1, %v268_v19 }
  0x86   : > { %910 = vmatmul.mubr.msk.f32.gmra.mrb[6].mxu0 %vm289_vm1, %v253_v20 }
  0x87   : > { %934 = vmatmul.mubr.msk.f32.gmra.mrb[6].mxu1 %vm289_vm1, %v269_v21  ;;  %912 = vmatprep.mubr.msk.f32.mxu0 %vm289_vm1, %v254_v22 }
  0x88   : > { %936 = vmatprep.mubr.msk.f32.mxu1 %vm289_vm1, %v270_v23 }
  0x8a   : > { %913 = vmatmul.mubr.msk.f32.gmra.mrb[8].mxu0 %vm289_vm1, %v255_v24 }
  0x8b   : > { %937 = vmatmul.mubr.msk.f32.gmra.mrb[8].mxu1 %vm289_vm1, %v271_v25  ;;  %915 = vmatprep.mubr.msk.f32.mxu0 %vm289_vm1, %v256_v26 }
  0x8c   : > { %939 = vmatprep.mubr.msk.f32.mxu1 %vm289_vm1, %v272_v27 }
  0x8e   : > { %916 = vmatmul.mubr.msk.f32.gmra.mrb[10].mxu0 %vm289_vm1, %v257_v28 }
  0x8f   : > { %940 = vmatmul.mubr.msk.f32.gmra.mrb[10].mxu1 %vm289_vm1, %v273_v29  ;;  %918 = vmatprep.mubr.msk.f32.mxu0 %vm289_vm1, %v258_v30 }
  0x90   : > { %942 = vmatprep.mubr.msk.f32.mxu1 %vm289_vm1, %v274_v31 }
  0x92   : > { %919 = vmatmul.mubr.msk.f32.gmra.mrb[12].mxu0 %vm289_vm1, %v259_v32 }
  0x93   : > { %943 = vmatmul.mubr.msk.f32.gmra.mrb[12].mxu1 %vm289_vm1, %v275_v33  ;;  %921 = vmatprep.mubr.msk.f32.mxu0 %vm289_vm1, %v260_v34 }
  0x94   : > { %945 = vmatprep.mubr.msk.f32.mxu1 %vm289_vm1, %v276_v35 }
  0x96   : > { %922 = vmatmul.mubr.msk.f32.gmra.mrb[14].mxu0 %vm289_vm1, %v261_v36 }
  0x97   : > { %946 = vmatmul.mubr.msk.f32.gmra.mrb[14].mxu1 %vm289_vm1, %v277_v37 }
 0x14d   : > { %v902_v39 = vpop.f32.mrb[0].mxu0 }
 0x14e   : > { %v926_v40 = vpop.f32.mrb[0].mxu1  ;;  %v462_v41 = vadd.f32 %v902_v39, %v1520_v38  ;;  %v456_v43 = vpop.f32.mrb[1].mxu0 }
 0x14f   : > { %v542_v42 = vadd.f32 %v926_v40, %v1520_v38  ;;  %v536_v44 = vpop.f32.mrb[1].mxu1  ;;  %v457_v45 = vadd.f32 %v1520_v38, %v456_v43 }
 0x150   : > { %v537_v46 = vadd.f32 %v1520_v38, %v536_v44  ;;  %v616_v47 = vmax.f32 %v462_v41, 0.0 }
 0x151   : > { %v632_v48 = vmax.f32 %v542_v42, 0.0  ;;  %v615_v49 = vmax.f32 %v457_v45, 0.0  ;;  %v905_v51 = vpop.f32.mrb[2].mxu0 }
 0x152   : > { %v631_v50 = vmax.f32 %v537_v46, 0.0  ;;  %v929_v52 = vpop.f32.mrb[2].mxu1  ;;  %649 = vst.msk [vmem:[%s1528_s20 + $0x8] sm:$0xff] %vm647_vm4, %v616_v47  ;;  %v472_v53 = vadd.f32 %v905_v51, %v1520_v38  ;;  %v466_v55 = vpop.f32.mrb[3].mxu0 }
 0x153   : > { %665 = vst.msk [vmem:[%s1528_s20 + $0x88] sm:$0xff] %vm647_vm4, %v632_v48  ;;  %v552_v54 = vadd.f32 %v929_v52, %v1520_v38  ;;  %v546_v56 = vpop.f32.mrb[3].mxu1  ;;  %648 = vst.msk [vmem:[%s1528_s20] sm:$0xff] %vm647_vm4, %v615_v49  ;;  %v467_v57 = vadd.f32 %v1520_v38, %v466_v55 }
 0x154   : > { %664 = vst.msk [vmem:[%s1528_s20 + $0x80] sm:$0xff] %vm647_vm4, %v631_v50  ;;  %v547_v58 = vadd.f32 %v1520_v38, %v546_v56  ;;  %v618_v59 = vmax.f32 %v472_v53, 0.0 }
 0x155   : > { %v634_v60 = vmax.f32 %v552_v54, 0.0  ;;  %v617_v61 = vmax.f32 %v467_v57, 0.0  ;;  %v908_v63 = vpop.f32.mrb[4].mxu0 }
 0x156   : > { %v633_v62 = vmax.f32 %v547_v58, 0.0  ;;  %v932_v0 = vpop.f32.mrb[4].mxu1  ;;  %651 = vst.msk [vmem:[%s1528_s20 + $0x18] sm:$0xff] %vm647_vm4, %v618_v59  ;;  %v482_v1 = vadd.f32 %v908_v63, %v1520_v38  ;;  %v476_v3 = vpop.f32.mrb[5].mxu0 }
 0x157   : > { %667 = vst.msk [vmem:[%s1528_s20 + $0x98] sm:$0xff] %vm647_vm4, %v634_v60  ;;  %v562_v2 = vadd.f32 %v932_v0, %v1520_v38  ;;  %v556_v4 = vpop.f32.mrb[5].mxu1  ;;  %650 = vst.msk [vmem:[%s1528_s20 + $0x10] sm:$0xff] %vm647_vm4, %v617_v61  ;;  %v477_v5 = vadd.f32 %v1520_v38, %v476_v3 }
 0x158   : > { %666 = vst.msk [vmem:[%s1528_s20 + $0x90] sm:$0xff] %vm647_vm4, %v633_v62  ;;  %v557_v6 = vadd.f32 %v1520_v38, %v556_v4  ;;  %v620_v7 = vmax.f32 %v482_v1, 0.0 }
 0x159   : > { %v636_v8 = vmax.f32 %v562_v2, 0.0  ;;  %v619_v9 = vmax.f32 %v477_v5, 0.0  ;;  %v911_v11 = vpop.f32.mrb[6].mxu0 }
 0x15a   : > { %v635_v10 = vmax.f32 %v557_v6, 0.0  ;;  %v935_v12 = vpop.f32.mrb[6].mxu1  ;;  %653 = vst.msk [vmem:[%s1528_s20 + $0x28] sm:$0xff] %vm647_vm4, %v620_v7  ;;  %v492_v13 = vadd.f32 %v911_v11, %v1520_v38  ;;  %v486_v15 = vpop.f32.mrb[7].mxu0 }
 0x15b   : > { %669 = vst.msk [vmem:[%s1528_s20 + $0xa8] sm:$0xff] %vm647_vm4, %v636_v8  ;;  %v572_v14 = vadd.f32 %v935_v12, %v1520_v38  ;;  %v566_v16 = vpop.f32.mrb[7].mxu1  ;;  %652 = vst.msk [vmem:[%s1528_s20 + $0x20] sm:$0xff] %vm647_vm4, %v619_v9  ;;  %v487_v17 = vadd.f32 %v1520_v38, %v486_v15 }
 0x15c   : > { %668 = vst.msk [vmem:[%s1528_s20 + $0xa0] sm:$0xff] %vm647_vm4, %v635_v10  ;;  %v567_v18 = vadd.f32 %v1520_v38, %v566_v16  ;;  %v622_v19 = vmax.f32 %v492_v13, 0.0 }
 0x15d   : > { %v638_v20 = vmax.f32 %v572_v14, 0.0  ;;  %v621_v21 = vmax.f32 %v487_v17, 0.0  ;;  %v914_v23 = vpop.f32.mrb[8].mxu0 }
 0x15e   : > { %v637_v22 = vmax.f32 %v567_v18, 0.0  ;;  %v938_v24 = vpop.f32.mrb[8].mxu1  ;;  %655 = vst.msk [vmem:[%s1528_s20 + $0x38] sm:$0xff] %vm647_vm4, %v622_v19  ;;  %v502_v25 = vadd.f32 %v914_v23, %v1520_v38  ;;  %v496_v27 = vpop.f32.mrb[9].mxu0 }
 0x15f   : > { %671 = vst.msk [vmem:[%s1528_s20 + $0xb8] sm:$0xff] %vm647_vm4, %v638_v20  ;;  %v582_v26 = vadd.f32 %v938_v24, %v1520_v38  ;;  %v576_v28 = vpop.f32.mrb[9].mxu1  ;;  %654 = vst.msk [vmem:[%s1528_s20 + $0x30] sm:$0xff] %vm647_vm4, %v621_v21  ;;  %v497_v29 = vadd.f32 %v1520_v38, %v496_v27 }
 0x160   : > { %670 = vst.msk [vmem:[%s1528_s20 + $0xb0] sm:$0xff] %vm647_vm4, %v637_v22  ;;  %v577_v30 = vadd.f32 %v1520_v38, %v576_v28  ;;  %v624_v31 = vmax.f32 %v502_v25, 0.0 }
 0x161   : > { %v640_v32 = vmax.f32 %v582_v26, 0.0  ;;  %v623_v33 = vmax.f32 %v497_v29, 0.0  ;;  %v917_v35 = vpop.f32.mrb[10].mxu0 }
 0x162   : > { %v639_v34 = vmax.f32 %v577_v30, 0.0  ;;  %v941_v36 = vpop.f32.mrb[10].mxu1  ;;  %657 = vst.msk [vmem:[%s1528_s20 + $0x48] sm:$0xff] %vm647_vm4, %v624_v31  ;;  %v512_v37 = vadd.f32 %v917_v35, %v1520_v38  ;;  %v506_v40 = vpop.f32.mrb[11].mxu0 }
 0x163   : > { %673 = vst.msk [vmem:[%s1528_s20 + $0xc8] sm:$0xff] %vm647_vm4, %v640_v32  ;;  %v592_v39 = vadd.f32 %v941_v36, %v1520_v38  ;;  %v586_v41 = vpop.f32.mrb[11].mxu1  ;;  %656 = vst.msk [vmem:[%s1528_s20 + $0x40] sm:$0xff] %vm647_vm4, %v623_v33  ;;  %v507_v42 = vadd.f32 %v1520_v38, %v506_v40 }
 0x164   : > { %672 = vst.msk [vmem:[%s1528_s20 + $0xc0] sm:$0xff] %vm647_vm4, %v639_v34  ;;  %v587_v43 = vadd.f32 %v1520_v38, %v586_v41  ;;  %v626_v44 = vmax.f32 %v512_v37, 0.0 }
 0x165   : > { %v642_v45 = vmax.f32 %v592_v39, 0.0  ;;  %v625_v46 = vmax.f32 %v507_v42, 0.0  ;;  %v920_v48 = vpop.f32.mrb[12].mxu0 }
 0x166   : > { %v641_v47 = vmax.f32 %v587_v43, 0.0  ;;  %v944_v49 = vpop.f32.mrb[12].mxu1  ;;  %659 = vst.msk [vmem:[%s1528_s20 + $0x58] sm:$0xff] %vm647_vm4, %v626_v44  ;;  %v522_v50 = vadd.f32 %v920_v48, %v1520_v38  ;;  %v516_v52 = vpop.f32.mrb[13].mxu0 }
 0x167   : > { %675 = vst.msk [vmem:[%s1528_s20 + $0xd8] sm:$0xff] %vm647_vm4, %v642_v45  ;;  %v602_v51 = vadd.f32 %v944_v49, %v1520_v38  ;;  %v596_v53 = vpop.f32.mrb[13].mxu1  ;;  %658 = vst.msk [vmem:[%s1528_s20 + $0x50] sm:$0xff] %vm647_vm4, %v625_v46  ;;  %v517_v54 = vadd.f32 %v1520_v38, %v516_v52 }
 0x168   : > { %674 = vst.msk [vmem:[%s1528_s20 + $0xd0] sm:$0xff] %vm647_vm4, %v641_v47  ;;  %v597_v55 = vadd.f32 %v1520_v38, %v596_v53  ;;  %v628_v56 = vmax.f32 %v522_v50, 0.0 }
 0x169   : > { %v644_v57 = vmax.f32 %v602_v51, 0.0  ;;  %v627_v58 = vmax.f32 %v517_v54, 0.0  ;;  %v923_v60 = vpop.f32.mrb[14].mxu0 }
 0x16a   : > { %v643_v59 = vmax.f32 %v597_v55, 0.0  ;;  %v947_v61 = vpop.f32.mrb[14].mxu1  ;;  %661 = vst.msk [vmem:[%s1528_s20 + $0x68] sm:$0xff] %vm647_vm4, %v628_v56  ;;  %v532_v62 = vadd.f32 %v923_v60, %v1520_v38  ;;  %v526_v0 = vpop.f32.mrb[15].mxu0 }
 0x16b   : > { %677 = vst.msk [vmem:[%s1528_s20 + $0xe8] sm:$0xff] %vm647_vm4, %v644_v57  ;;  %v612_v63 = vadd.f32 %v947_v61, %v1520_v38  ;;  %v606_v1 = vpop.f32.mrb[15].mxu1  ;;  %660 = vst.msk [vmem:[%s1528_s20 + $0x60] sm:$0xff] %vm647_vm4, %v627_v58  ;;  %v527_v2 = vadd.f32 %v1520_v38, %v526_v0 }
 0x16c   : > { %676 = vst.msk [vmem:[%s1528_s20 + $0xe0] sm:$0xff] %vm647_vm4, %v643_v59  ;;  %v607_v3 = vadd.f32 %v1520_v38, %v606_v1  ;;  %v630_v4 = vmax.f32 %v532_v62, 0.0 }
 0x16d   : > { %v646_v5 = vmax.f32 %v612_v63, 0.0  ;;  %v629_v6 = vmax.f32 %v527_v2, 0.0 }
 0x16e   : > { %v645_v7 = vmax.f32 %v607_v3, 0.0  ;;  %663 = vst.msk [vmem:[%s1528_s20 + $0x78] sm:$0xff] %vm647_vm4, %v630_v4 }
 0x16f   : > { %679 = vst.msk [vmem:[%s1528_s20 + $0xf8] sm:$0xff] %vm647_vm4, %v646_v5  ;;  %662 = vst.msk [vmem:[%s1528_s20 + $0x70] sm:$0xff] %vm647_vm4, %v629_v6 }
 0x170   : > { %678 = vst.msk [vmem:[%s1528_s20 + $0xf0] sm:$0xff] %vm647_vm4, %v645_v7 }
 0x171   : > { %1149 = shalt.err (!%p1146_p5)
}
 0x172   : > { %s1150_s21 = scalar_lea.hbm %s1619_s18, 4096  ;;  %s1154_s5 = scalar_lea.hbm %s1680_s3, 16384 }
 0x173   : > { %p1151_p9 = scmp.ne.s32.totalorder %s1619_s18, %s1150_s21  ;;  %p1155_p3 = scmp.lt.u32.totalorder %s1619_s18, %s1680_s3 }
 0x174   : > { %p1156_p7 = scmp.lt.u32.totalorder %s1154_s5, %s1150_s21  ;;  %p1158_p2 = scmp.lt.u32.totalorder %s1150_s21, %s1619_s18 }
 0x175   : > { %p1152_p12 = pnand %p1151_p9, %p1382_p11 }
 0x176   : > { %p1157_p10 = por %p1156_p7, %p1155_p3 }
 0x177   : > { %p1153_p1 = pneg %p1152_p12 }
 0x178   : > { %p1159_p4 = por %p1158_p2, %p1157_p10 }
 0x17a   : > { %p1160_p6 = pnand %p1159_p4, %p1153_p1 }
 0x17c   : > { %1163 = shalt.err (!%p1160_p6)
}
 0x17d   : > { %s1231_s20 = smov 128   ;;  %s1232_s22 = smov 8  }
 0x17e   : > { %972 = dma.vmem_to_hbm [thread:$0]  (%p1382_p11), %s1621_s24, 4096, %s1619_s18, %s681_s26, %s1231_s20, %s1231_s20, %s1232_s22  }
 0x17f PF: > { %p994_p8 = scmp.ge.s32.totalorder %s1222_s17, 2  ;;  %s710_s15 = sand.u32 1, %s1202_s12  }
 0x180   : > { %p1697_p13 = scmp.ne.s32.totalorder %s1688_s23, 0  ;;  %s711_s11 = scalar_lea.sflag [#allocation4], %s710_s15 }
 0x182   : > { %p986_p0 = pnand %p994_p8, %p1697_p13 }
 0x184   : > { %1197 = dma.done.wait (!%p986_p0), %s711_s11, 4096  }
 0x185   : > { %1199 = vsyncadd (!%p986_p0), %s711_s11, 4294963200  ;;  %s20_s17 = sadd.s32 1, %s1222_s17   ;;  %s1698_s12 = smov %s1206_s13 }
 0x186   : > { %p17_p5 = scmp.ge.s32.totalorder %s20_s17, 6   ;;  %s1699_s13 = smov %s1210_s14 }
 0x187   : > { %s1700_s14 = smov %s1391_s6  ;;  %s1701_s15 = smov %s1218_s16 }
 0x188   : > { %s1702_s16 = smov %s1704_s25  ;;  %19 = sbr.rel (!%p17_p5) target bundleno = 7 (0x7), region = 87 }
 0x18f   :  { %716 = vsyncpa [#allocation3], 1 }
 0x190   :  { %718 = vsyncpa [#allocation3 + $0x1], 1 }
 0x191   :  { %719 = vsyncpa [#allocation6], 1 }
 0x192   :  { %720 = vsyncpa [#allocation4], 1 }
 0x193   :  { %722 = vsyncpa [#allocation4 + $0x1], 1 }

</bundles_post_ra>
